<compile_context>
chip_gen: v7x
topology: tpu7x:2x2x1
jax: 0.10.0
libtpu: 0.0.40
codegen_flags: <defaults>
</compile_context>

<pallas_src>
import math
from functools import partial

import jax
import jax.numpy as jnp
import numpy as np
from jax.experimental import pallas as pl
from jax.experimental.pallas import tpu as pltpu


# --------------------------------------------------------------------------------------
# Host-side helpers
# --------------------------------------------------------------------------------------

def _make_interp_matrix(in_size: int, out_size: int, scale: float) -> jnp.ndarray:
    """(out_size, in_size) 1-D linear-interp matrix matching
    torch.nn.functional.interpolate(mode='bilinear', align_corners=False) for the
    scale_factor code path (ratio = 1/scale_factor)."""
    ratio = 1.0 / float(scale)
    j = jnp.arange(out_size, dtype=jnp.float32)
    src = (j + 0.5) * ratio - 0.5
    src = jnp.maximum(src, 0.0)                      # clamp negative source idx to 0
    i0 = jnp.floor(src).astype(jnp.int32)
    i0 = jnp.minimum(i0, in_size - 1)
    i1 = jnp.minimum(i0 + 1, in_size - 1)
    lam1 = src - i0.astype(jnp.float32)
    lam0 = 1.0 - lam1
    w = (jax.nn.one_hot(i0, in_size, dtype=jnp.float32) * lam0[:, None]
         + jax.nn.one_hot(i1, in_size, dtype=jnp.float32) * lam1[:, None])
    return w  # (out_size, in_size)


def _padded_bytes(rows: int, cols: int, itemsize: int) -> int:
    # VMEM tile padding estimate: sublane -> 8, lane -> 128.
    return (-(-rows // 8) * 8) * (-(-cols // 128) * 128) * itemsize


def _vmem_plan():
    """Generation-aware (vmem_limit_bytes, per-step block budget)."""
    cap = 64 << 20  # conservative default = v7x per-TensorCore VMEM
    try:
        info = pltpu.get_tpu_info()
        cap = int(getattr(info, "vmem_capacity_bytes", cap)) or cap
    except Exception:
        pass
    # Leave headroom for compiler-internal scratch; ~96 MiB on v5e/v6e, ~48 MiB on v7x.
    vmem_limit = max(32 << 20, min(cap * 3 // 4, cap - (8 << 20)))
    block_budget = vmem_limit * 3 // 4
    return int(vmem_limit), int(block_budget)


def _choose_lane_pack(nc: int, w_out: int) -> int:
    """Pick g (planes packed along the lane axis) so the output last dim is lane-dense."""
    if w_out >= 128:
        return 1
    divisors = [d for d in range(1, nc + 1) if nc % d == 0]
    for d in divisors:  # prefer an exact multiple of 128 lanes, modest size
        if d * w_out >= 128 and (d * w_out) % 128 == 0 and d * w_out <= 512:
            return d
    for d in divisors:
        if d * w_out >= 128:
            return d
    return nc


_SWEET_BYTES = 8 << 20   # per-step x+out block sweet spot (measured 512-1024-row regime)
_MAX_UNROLL = 32         # cap on planes per step (kernel is unrolled over them)


def _plan_tiles(num_groups, h_in, gw_in, h_out, gw_out, xbytes, wbytes, budget):
    """Pick (planes-per-step b, H_out tile th)."""
    # Weight operands (Wh, Ww^T), conservatively counted double-buffered.
    w_fp = 2 * (_padded_bytes(h_out, h_in, wbytes) + _padded_bytes(gw_in, gw_out, wbytes))
    data_budget = max(budget - w_fp, budget // 4)

    def data_fp(b, th):
        return 2 * b * (_padded_bytes(h_in, gw_in, xbytes) + _padded_bytes(th, gw_out, xbytes))

    # H_out tile: divisor of h_out, multiple of 8 (or full h_out); largest that fits.
    th_cands = sorted({d for d in range(8, h_out + 1) if h_out % d == 0 and d % 8 == 0}
                      | {h_out}, reverse=True)
    th = None
    for cand in th_cands:
        if data_fp(1, cand) <= data_budget:
            th = cand
            break
    if th is None:
        # TODO(synk): add W_out tiling for planes too wide to fit even one row tile.
        th = min(th_cands)
    n_h = h_out // th

    # Plane batch: largest divisor of num_groups within budget / sweet spot / unroll cap.
    per = data_fp(1, th)
    b = 1
    for d in range(2, num_groups + 1):
        if num_groups % d != 0 or d > _MAX_UNROLL:
            continue
        if d * per <= min(data_budget, _SWEET_BYTES):
            b = d

    # Keep at least 2 grid steps when possible (v7x has 2 TensorCores on the parallel axis).
    if num_groups // b == 1 and n_h == 1 and num_groups >= 2:
        cands = [d for d in range(1, num_groups) if num_groups % d == 0 and num_groups // d >= 2]
        if cands:
            b = max(cands)
    return b, th


# --------------------------------------------------------------------------------------
# Kernel
# --------------------------------------------------------------------------------------

def _interp_kernel(x_ref, wh_ref, wwT_ref, o_ref, *, nb, h_first):
    # x_ref:   (nb, H_in,  gW_in)   -- nb plane-groups, each lane-packed
    # wh_ref:  (th, H_in)           -- H_out-tile of the height interp matrix
    # wwT_ref: (gW_in, gW_out)      -- (block-diag over g) width interp matrix, transposed
    # o_ref:   (nb, th, gW_out)
    wh = wh_ref[...]
    wwT = wwT_ref[...]
    for p in range(nb):  # short static unrolled loop over the plane-groups in this block
        xp = x_ref[p]
        if h_first:
            t = jnp.dot(wh, xp.astype(wh.dtype), preferred_element_type=jnp.float32)
            y = jnp.dot(t.astype(wwT.dtype), wwT, preferred_element_type=jnp.float32)
        else:
            t = jnp.dot(xp.astype(wwT.dtype), wwT, preferred_element_type=jnp.float32)
            y = jnp.dot(wh, t.astype(wh.dtype), preferred_element_type=jnp.float32)
        o_ref[p] = y.astype(o_ref.dtype)


# --------------------------------------------------------------------------------------
# Wrapper (module forward)
# --------------------------------------------------------------------------------------

def interpolate_layer(x: jnp.ndarray, scale_factor, mode: str = "bilinear") -> jnp.ndarray:
    """Pallas TPU implementation of InterpolateLayer.forward for 4-D NCHW input."""
    assert mode == "bilinear", "only bilinear mode implemented"
    # TODO(synk): other interpolate modes (nearest, bicubic, trilinear) not implemented.
    n, c, h_in, w_in = x.shape
    if isinstance(scale_factor, (tuple, list)):
        sf_h, sf_w = float(scale_factor[0]), float(scale_factor[1])
    else:
        sf_h = sf_w = float(scale_factor)
    # PyTorch output size: floor(in_size * scale_factor).
    h_out = int(math.floor(h_in * sf_h))
    w_out = int(math.floor(w_in * sf_w))

    nc = n * c
    xbytes = x.dtype.itemsize
    wdtype = jnp.bfloat16 if x.dtype == jnp.bfloat16 else jnp.float32
    wbytes = jnp.dtype(wdtype).itemsize

    # Lane packing for lane-dense output stores.
    g = _choose_lane_pack(nc, w_out)
    num_groups = nc // g
    gw_in, gw_out = g * w_in, g * w_out

    vmem_limit, budget = _vmem_plan()
    b, th = _plan_tiles(num_groups, h_in, gw_in, h_out, gw_out, xbytes, wbytes, budget)
    n_h = h_out // th

    # Matmul order: MAC counts per plane-group (no block-diag waste in the count anymore).
    if n_h > 1:
        h_first = True  # only the tiled output rows are ever computed
    else:
        flops_h_first = h_out * h_in * gw_in + h_out * gw_in * gw_out
        flops_w_first = h_in * gw_in * gw_out + h_out * h_in * gw_out
        h_first = flops_h_first <= flops_w_first

    # Interpolation matrices.
    wh_f32 = _make_interp_matrix(h_in, h_out, sf_h)          # (H_out, H_in)
    wwT_f32 = _make_interp_matrix(w_in, w_out, sf_w).T       # (W_in, W_out)
    if g > 1:
        wwT_f32 = jnp.kron(jnp.eye(g, dtype=jnp.float32), wwT_f32)   # (gW_in, gW_out)
    wh_arr = wh_f32.astype(wdtype)
    wwT_arr = wwT_f32.astype(wdtype)

    # Pack g planes along the lane axis (free reshape when g == 1).
    if g > 1:
        x3 = (x.reshape(num_groups, g, h_in, w_in)
               .transpose(0, 2, 1, 3)
               .reshape(num_groups, h_in, gw_in))
    else:
        x3 = x.reshape(num_groups, h_in, w_in)

    out3 = pl.pallas_call(
        partial(_interp_kernel, nb=b, h_first=h_first),
        out_shape=jax.ShapeDtypeStruct((num_groups, h_out, gw_out), x.dtype),
        grid=(num_groups // b, n_h),
        in_specs=[
            pl.BlockSpec((b, h_in, gw_in), lambda i, j: (i, 0, 0)),
            pl.BlockSpec((th, h_in), lambda i, j: (j, 0)),
            pl.BlockSpec((gw_in, gw_out), lambda i, j: (0, 0)),
        ],
        out_specs=pl.BlockSpec((b, th, gw_out), lambda i, j: (i, j, 0)),
        compiler_params=pltpu.CompilerParams(
            dimension_semantics=("parallel", "arbitrary"),
            vmem_limit_bytes=vmem_limit,
        ),
    )(x3, wh_arr, wwT_arr)

    # Unpack the lane-packed planes (free reshape when g == 1).
    if g > 1:
        out = (out3.reshape(num_groups, h_out, g, w_out)
                    .transpose(0, 2, 1, 3)
                    .reshape(n, c, h_out, w_out))
    else:
        out = out3.reshape(n, c, h_out, w_out)
    return out


# --------------------------------------------------------------------------------------
# Self-test
# --------------------------------------------------------------------------------------

if __name__ == "__main__":
    key = jax.random.PRNGKey(0)
    N, C, H, W = 2, 4, 16, 16
    scale_factor = 2.0

    x = jax.random.normal(key, (N, C, H, W), dtype=jnp.float32)

    out = interpolate_layer(x, scale_factor=scale_factor, mode="bilinear")
    out = jax.block_until_ready(out)

    # Reference in float64 using the same separable interpolation matrices.
    H_out, W_out = int(H * scale_factor), int(W * scale_factor)
    wh_np = np.asarray(_make_interp_matrix(H, H_out, scale_factor), dtype=np.float64)
    ww_np = np.asarray(_make_interp_matrix(W, W_out, scale_factor), dtype=np.float64)
    x_np = np.asarray(x, dtype=np.float64)
    ref = np.einsum("oh,nchw,pw->ncop", wh_np, x_np, ww_np)

    assert out.shape == (N, C, H_out, W_out)
    out_np = np.asarray(out, dtype=np.float64)
    assert np.allclose(out_np, ref, atol=1e-3, rtol=1e-3), float(np.abs(out_np - ref).max())

    print("KERNEL_OK")
</pallas_src>

<mosaic_0001>
module attributes {stable_mosaic.version = 11 : i64} {
  func.func @_interp_kernel(%arg0: i32, %arg1: i32, %arg2: memref<1x16x64xf32, #tpu.memory_space<vmem>>, %arg3: memref<32x16xf32, #tpu.memory_space<vmem>>, %arg4: memref<64x128xf32, #tpu.memory_space<vmem>>, %arg5: memref<1x32x128xf32, #tpu.memory_space<vmem>>) attributes {dimension_semantics = [#tpu.dimension_semantics<parallel>, #tpu.dimension_semantics<arbitrary>], iteration_bounds = array<i64: 2, 1>, scalar_prefetch = 0 : i64, scratch_operands = 0 : i64, tpu.core_type = #tpu.core_type<tc>, window_params = [{transform_indices = @transform_0, window_bounds = array<i64: 1, 16, 64>}, {transform_indices = @transform_1, window_bounds = array<i64: 32, 16>}, {pipeline_mode = #tpu.pipeline_mode<synchronous>, transform_indices = @transform_2, window_bounds = array<i64: 64, 128>}, {transform_indices = @transform_3, window_bounds = array<i64: 1, 32, 128>}]} {
    %c0 = arith.constant 0 : index
    %c0_0 = arith.constant 0 : index
    %0 = vector.load %arg3[%c0, %c0_0] : memref<32x16xf32, #tpu.memory_space<vmem>>, vector<32x16xf32>
    %c0_1 = arith.constant 0 : index
    %c0_2 = arith.constant 0 : index
    %1 = vector.load %arg4[%c0_1, %c0_2] : memref<64x128xf32, #tpu.memory_space<vmem>>, vector<64x128xf32>
    %c0_3 = arith.constant 0 : index
    %c0_4 = arith.constant 0 : index
    %c0_5 = arith.constant 0 : index
    %2 = vector.load %arg2[%c0_3, %c0_4, %c0_5] : memref<1x16x64xf32, #tpu.memory_space<vmem>>, vector<1x16x64xf32>
    %3 = vector.shape_cast %2 : vector<1x16x64xf32> to vector<16x64xf32>
    %cst = arith.constant dense<0.000000e+00> : vector<16x128xf32>
    %4 = tpu.matmul %3, %1, %cst {dimension_numbers = #tpu.dot_dimension_numbers<[1], [0], [0], [1], [0, 0, 1, 1], [], []>} : vector<16x64xf32>, vector<64x128xf32>, vector<16x128xf32> -> vector<16x128xf32>
    %cst_6 = arith.constant dense<0.000000e+00> : vector<32x128xf32>
    %5 = tpu.matmul %0, %4, %cst_6 {dimension_numbers = #tpu.dot_dimension_numbers<[1], [0], [0], [1], [0, 0, 1, 1], [], []>} : vector<32x16xf32>, vector<16x128xf32>, vector<32x128xf32> -> vector<32x128xf32>
    %c0_7 = arith.constant 0 : index
    %c0_8 = arith.constant 0 : index
    %c0_9 = arith.constant 0 : index
    %6 = vector.load %arg5[%c0_7, %c0_8, %c0_9] : memref<1x32x128xf32, #tpu.memory_space<vmem>>, vector<1x32x128xf32>
    %7 = vector.shape_cast %6 : vector<1x32x128xf32> to vector<32x128xf32>
    %8 = vector.shape_cast %5 : vector<32x128xf32> to vector<1x32x128xf32>
    tpu.vector_store %arg5[%c0_7, %c0_8, %c0_9], %8 {strides = array<i32>} : memref<1x32x128xf32, #tpu.memory_space<vmem>>, vector<1x32x128xf32>,
    return
  }
  func.func @transform_0(%arg0: i32, %arg1: i32) -> (i32, i32, i32) {
    %c0_i32 = arith.constant 0 : i32
    %c0_i32_0 = arith.constant 0 : i32
    %c0_i32_1 = arith.constant 0 : i32
    return %arg0, %c0_i32, %c0_i32_0 : i32, i32, i32
  }
  func.func @transform_1(%arg0: i32, %arg1: i32) -> (i32, i32) {
    %c0_i32 = arith.constant 0 : i32
    %c0_i32_0 = arith.constant 0 : i32
    return %arg1, %c0_i32 : i32, i32
  }
  func.func @transform_2(%arg0: i32, %arg1: i32) -> (i32, i32) {
    %c0_i32 = arith.constant 0 : i32
    %c0_i32_0 = arith.constant 0 : i32
    %c0_i32_1 = arith.constant 0 : i32
    return %c0_i32, %c0_i32_0 : i32, i32
  }
  func.func @transform_3(%arg0: i32, %arg1: i32) -> (i32, i32, i32) {
    %c0_i32 = arith.constant 0 : i32
    %c0_i32_0 = arith.constant 0 : i32
    return %arg0, %arg1, %c0_i32 : i32, i32, i32
  }
}

</mosaic_0001>

<bundles_post_ra>
// kernel: tpu_custom_call.1
= control target key start
LH: loop header
LB: loop body
LE: loop exit
PB: predicated region body
PF: predicated region fallthrough
CT: control target
= control target key end

     0   :  { %8 = vsyncpa [#allocation3], 0  ;;  %s999_s0 = inlined_call_operand.vmem [shape: f32[2,16,64], index: 0, kind: input, shape index: {}]   ;;  %s1000_s1 = inlined_call_operand.vmem [shape: f32[32,16], index: 1, kind: input, shape index: {}]   ;;  %s1001_s2 = inlined_call_operand.hbm [shape: f32[64,128], index: 2, kind: input, shape index: {}]   ;;  %s1002_s3 = inlined_call_operand.hbm [shape: f32[2,32,128], index: 3, kind: output, shape index: {}]  }
   0x1   :  { %9 = vsyncpa [#allocation4], 0 }
   0x2   :  { %11 = vsyncpa [#allocation4 + $0x1], 0  ;;  %s832_s12 = smov 0   ;;  %s834_s13 = smov 0  }
   0x3   :  { %s836_s14 = smov 0   ;;  %s838_s15 = smov 0  }
   0x4   :  { %s840_s16 = smov 0   ;;  %s842_s17 = smov 0  }
   0x5 LB: > { %s535_s18 = sadd.s32 4294967295, %s804_s17   ;;  %s536_s19 = sadd.s32 4294967294, %s804_s17   ;;  %s804_s17 = sphi %s842_s17, %s17_s17   ;;  %s800_s16 = sphi %s840_s16, %s1020_s16   ;;  %s796_s15 = sphi %s838_s15, %s1019_s15   ;;  %s792_s14 = sphi %s836_s14, %s1018_s14   ;;  %s788_s13 = sphi %s834_s13, %s1017_s13   ;;  %s784_s12 = sphi %s832_s12, %s1016_s12  }
   0x6   : > { %s29_s20 = sadd.s32 1, %s800_s16  ;;  %s111_s21 = sadd.s32 1, %s792_s14 }
   0x7   : > { %p31_p0 = scmp.ge.s32.totalorder %s29_s20, 2  ;;  %p121_p1 = scmp.ne.s32.totalorder %s792_s14, %s788_s13 }
   0x8   : > { %p122_p2 = scmp.eq.s32.totalorder %s535_s18, 1  ;;  %p127_p3 = scmp.ne.s32.totalorder %s788_s13, %s784_s12 }
   0x9   : > { %s1022_s20 = smov (%p31_p0, %s29_s20), 0  ;;  %p128_p5 = scmp.eq.s32.totalorder %s536_s19, 1 }
   0xa   : > { %p872_p4 = por %p122_p2, %p121_p1  ;;  %s106_s23 = ssub.s32 %s800_s16, %s1022_s20 }
   0xb   : > { %p537_p6 = scmp.ge.s32.totalorder %s804_s17, 1  ;;  %p109_p7 = scmp.eq.s32.totalorder %s106_s23, 0 }
   0xc   : > { %s1007_s22 = scalar_select %p872_p4, 1, 0 }
   0xd   : > { %p879_p8 = por %p128_p5, %p127_p3  ;;  %p135_p9 = scmp.lt.s32.totalorder %s804_s17, 3 }
   0xe   : > { %s885_s25 = scalar_select %p109_p7, %s792_s14, %s111_s21  }
   0xf   : > { %s1008_s24 = scalar_select %p879_p8, 1, 0 }
  0x10   : > { %p887_p10 = pnand %p537_p6, %p135_p9  ;;  %p891_p11 = scmp.eq.s32.totalorder %s535_s18, 0 }
  0x11   : > { %s806_s28 = smov [#allocation2]   ;;  %s694_s6 = scalar_lea.hbm %s1001_s2, 1024 }
  0x12   : > { %s1009_s26 = scalar_select %p887_p10, 1, 0 }
  0x13   : > { %s1010_s27 = scalar_select %p891_p11, 1, 0 }
  0x14   : > { %p630_p12 = pneg %p887_p10  ;;  %s156_s29 = sshll.u32 %s806_s28, 4  ;;  %s157_s29 = int_to_ptr.vmem [resolvable:$true] %s156_s29 }
  0x15   : > { %p695_p0 = scmp.ne.s32.totalorder %s1001_s2, %s694_s6  ;;  %p701_p5 = scmp.lt.u32.totalorder %s694_s6, %s1001_s2 }
  0x16   : > { %p899_p13 = pnand %p891_p11, %p630_p12 }
  0x18   : > { %p696_p1 = pneg %p899_p13 }
  0x1a   : > { %p697_p2 = pnand %p696_p1, %p695_p0 }
  0x1c   : > { %p698_p3 = pneg %p697_p2 }
  0x1e   : > { %p703_p6 = pnand %p701_p5, %p698_p3 }
  0x20   : > { %706 = shalt.err (!%p703_p6)
}
  0x21   : > { %s707_s11 = scalar_lea.vmem %s157_s29, 1024  ;;  %p715_p8 = scmp.lt.s32.totalorder %s157_s29, %s157_s29 }
  0x22   : > { %p708_p7 = scmp.ne.s32.totalorder %s157_s29, %s707_s11  ;;  %p716_p4 = scmp.lt.s32.totalorder %s707_s11, %s707_s11 }
  0x24   : > { %p710_p9 = pnand %p708_p7, %p696_p1  ;;  %p717_p11 = por %p716_p4, %p715_p8 }
  0x26   : > { %p711_p12 = pneg %p710_p9 }
  0x28   : > { %p718_p10 = pnand %p717_p11, %p711_p12 }
  0x2a   : > { %721 = shalt.err (!%p718_p10)
}
  0x2b   : > { %s807_s18 = smov 128   ;;  %s808_s19 = smov 8  }
  0x2c   : > { %633 = dma.hbm_to_vmem [thread:$0]  (!%p899_p13), %s1001_s2, 1024, %s157_s29, [#allocation3], %s807_s18, %s807_s18, %s808_s19  }
  0x2d   : > { %p1012_p0 = scmp.ne.s32.totalorder %s1009_s26, 0 }
  0x2e   : > { %p1013_p2 = scmp.ne.s32.totalorder (!%p1012_p0), %s1010_s27, 0 }
  0x2f   : > { %180 = sbr.rel (%p1012_p0) target bundleno = 525 (0x20d), region = 32 }
  0x36   : > { %775 = dma.done.wait (%p1013_p2), [#allocation3], 1024  }
  0x37   : > { %777 = vsyncadd (%p1013_p2), [#allocation3], 4294966272  ;;  %p209_p4 = scmp.lt.s32.totalorder %s796_s15, 1  ;;  %v225_v0 = vld [vmem:[#allocation2] sm:$0xff]  ;;  %v226_v1 = vld [vmem:[#allocation2 + $0x8] sm:$0xff]  ;;  %vm235_vm0 = vcmask 523264  }
  0x38   : > { %v227_v2 = vld [vmem:[#allocation2 + $0x10] sm:$0xff]  ;;  %v604_v3 = vpack.c.bf16 %v226_v1, %v225_v0  ;;  %v228_v4 = vld [vmem:[#allocation2 + $0x18] sm:$0xff]  ;;  %v229_v6 = vld [vmem:[#allocation2 + $0x20] sm:$0xff]  ;;  %vm317_vm1 = vcmask 130048   ;;  %s206_s18 = sand.u32 1, %s788_s13   ;;  %p1014_p10 = scmp.ne.s32.totalorder %s1007_s22, 0 }
  0x39   : > { %s210_s28 = scalar_select %p209_p4, %s796_s15, 1  ;;  %v608_v5 = vpack.c.bf16 %v228_v4, %v227_v2  ;;  %v230_v7 = vld [vmem:[#allocation2 + $0x28] sm:$0xff]  ;;  %v231_v10 = vld [vmem:[#allocation2 + $0x30] sm:$0xff]  ;;  %v232_v11 = vld [vmem:[#allocation2 + $0x38] sm:$0xff] }
  0x3a   : > { %605 = vmatprep.subr.bf16.mxu0 %v604_v3  ;;  %v612_v9 = vpack.c.bf16 %v230_v7, %v229_v6  ;;  %v616_v12 = vpack.c.bf16 %v232_v11, %v231_v10  ;;  %v221_v14 = vld [vmem:[%s1000_s1] sm:$0xff]  ;;  %v222_v18 = vld [vmem:[%s1000_s1 + $0x8] sm:$0xff]  ;;  %v223_v19 = vld [vmem:[%s1000_s1 + $0x10] sm:$0xff]  ;;  %s543_s19 = sshll.u32 %s206_s18, 5  ;;  %s809_s26 = smov [#allocation5]  }
  0x3b   : > { %s557_s4 = sshll.u32 %s210_s28, 4  ;;  %607 = vmatpush3.bf16.msra.mxu0 %v604_v3  ;;  %598 = vmatprep.mubr.msk.f32.mxu1 %vm317_vm1, %v221_v14  ;;  %v224_v20 = vld [vmem:[%s1000_s1 + $0x18] sm:$0xff]  ;;  %s208_s21 = scalar_lea.vmem [#allocation5], %s543_s19 }
  0x3c   : > { %s213_s6 = scalar_lea.vmem %s999_s0, %s557_s4  ;;  %609 = vmatprep.subr.bf16.mxu0 %v608_v5  ;;  %s435_s23 = sshll.u32 %s208_s21, 4  ;;  %s946_s23 = int_to_ptr.vmem [resolvable:$true] %s435_s23 }
  0x3d   : > { %v233_v8 = vld [vmem:[%s213_s6] sm:$0xff]  ;;  %v234_v13 = vld [vmem:[%s213_s6 + $0x8] sm:$0xff]  ;;  %s558_s28 = sshll.u32 %s796_s15, 9  ;;  %s953_s6 = scalar_lea.sflag [#allocation4], %s206_s18 }
  0x3e   : > { %591 = vmatprep.mubr.msk.f32.mxu0 %vm235_vm0, %v233_v8  ;;  %s951_s30 = scalar_lea.hbm %s1002_s3, %s558_s28  ;;  %s722_s15 = scalar_lea.vmem %s946_s23, 512 }
  0x3f   : > { %611 = vmatpush3.bf16.msra.mxu0 %v608_v5  ;;  %p723_p8 = scmp.ne.s32.totalorder %s946_s23, %s722_s15  ;;  %s726_s27 = sshll.u32 %s809_s26, 4  ;;  %s727_s27 = int_to_ptr.vmem [resolvable:$false] %s726_s27 }
  0x40   : > { %613 = vmatprep.subr.bf16.mxu0 %v612_v9  ;;  %s728_s29 = scalar_lea.vmem %s727_s27, 1024  ;;  %p729_p1 = scmp.lt.s32.totalorder %s946_s23, %s727_s27 }
  0x41   : > { %p724_p11 = pnand %p723_p8, %p1014_p10  ;;  %p730_p3 = scmp.lt.s32.totalorder %s728_s29, %s722_s15 }
  0x43   : > { %615 = vmatpush3.bf16.msra.mxu0 %v612_v9  ;;  %p725_p13 = pneg %p724_p11  ;;  %p731_p5 = por %p730_p3, %p729_p1 }
  0x44   : > { %617 = vmatprep.subr.bf16.mxu0 %v616_v12 }
  0x45   : > { %p732_p6 = pnand %p731_p5, %p725_p13 }
  0x47   : > { %619 = vmatpush3.bf16.msra.mxu0 %v616_v12 }
  0x4a   : > { %592 = vmatmul.mubr.msk.f32.vlgmr.msra.gmra.mrb[0].mxu0 %vm235_vm0, %v234_v13 }
 0x11d   : > { %v593_v15 = vpop.f32.mrb[0].mxu0 }
 0x11e   : > { %v308_v16 = vpop.f32.mrb[1].mxu0 }
 0x11f   : > { %v620_v17 = vpack.c.bf16 %v593_v15, %v308_v16 }
 0x121   : > { %621 = vmatprep.subr.bf16.mxu1 %v620_v17 }
 0x122   : > { %623 = vmatpush3.bf16.msra.mxu1 %v620_v17 }
 0x125   : > { %599 = vmatmul.mubr.msk.f32.vlgmr.msra.gmra.mrb[0].mxu1 %vm317_vm1, %v222_v18 }
 0x126   : > { %601 = vmatprep.mubr.msk.f32.mxu1 %vm317_vm1, %v223_v19 }
 0x129   : > { %602 = vmatmul.mubr.msk.f32.gmra.mrb[2].mxu1 %vm317_vm1, %v224_v20 }
 0x1f8   : > { %v600_v21 = vpop.f32.mrb[0].mxu1 }
 0x1f9   : > { %416 = vst [vmem:[%s208_s21 + $0x8] sm:$0xff] %v600_v21  ;;  %v396_v22 = vpop.f32.mrb[1].mxu1 }
 0x1fa   : > { %415 = vst [vmem:[%s208_s21] sm:$0xff] %v396_v22 }
 0x1fc   : > { %v603_v23 = vpop.f32.mrb[2].mxu1 }
 0x1fd   : > { %418 = vst [vmem:[%s208_s21 + $0x18] sm:$0xff] %v603_v23  ;;  %v406_v24 = vpop.f32.mrb[3].mxu1 }
 0x1fe   : > { %417 = vst [vmem:[%s208_s21 + $0x10] sm:$0xff] %v406_v24 }
 0x1ff   : > { %735 = shalt.err (!%p732_p6)
}
 0x200   : > { %s736_s7 = scalar_lea.hbm %s951_s30, 512  ;;  %s740_s10 = scalar_lea.hbm %s1002_s3, 1024 }
 0x201   : > { %p737_p7 = scmp.ne.s32.totalorder %s951_s30, %s736_s7  ;;  %p741_p0 = scmp.lt.u32.totalorder %s951_s30, %s1002_s3 }
 0x202   : > { %p742_p2 = scmp.lt.u32.totalorder %s740_s10, %s736_s7  ;;  %p744_p8 = scmp.lt.u32.totalorder %s736_s7, %s951_s30 }
 0x203   : > { %p738_p9 = pnand %p737_p7, %p1014_p10 }
 0x204   : > { %p743_p4 = por %p742_p2, %p741_p0 }
 0x205   : > { %p739_p12 = pneg %p738_p9 }
 0x206   : > { %p745_p11 = por %p744_p8, %p743_p4 }
 0x208   : > { %p746_p13 = pnand %p745_p11, %p739_p12 }
 0x20a   : > { %749 = shalt.err (!%p746_p13)
}
 0x20b   : > { %s810_s19 = smov 128   ;;  %s811_s21 = smov 8  }
 0x20c   : > { %628 = dma.vmem_to_hbm [thread:$0]  (%p1014_p10), %s946_s23, 512, %s951_s30, %s953_s6, %s810_s19, %s810_s19, %s811_s21  }
 0x20d PF: > { %p640_p1 = scmp.ge.s32.totalorder %s804_s17, 2  ;;  %s450_s28 = sand.u32 1, %s784_s12  }
 0x20e   : > { %p1015_p3 = scmp.ne.s32.totalorder %s1008_s24, 0  ;;  %s451_s4 = scalar_lea.sflag [#allocation4], %s450_s28 }
 0x210   : > { %p635_p5 = pnand %p640_p1, %p1015_p3 }
 0x212   : > { %779 = dma.done.wait (!%p635_p5), %s451_s4, 512  }
 0x213   : > { %781 = vsyncadd (!%p635_p5), %s451_s4, 4294966784  ;;  %s17_s17 = sadd.s32 1, %s804_s17   ;;  %s1016_s12 = smov %s788_s13 }
 0x214   : > { %p14_p6 = scmp.ge.s32.totalorder %s17_s17, 4   ;;  %s1017_s13 = smov %s792_s14 }
 0x215   : > { %s1018_s14 = smov %s885_s25  ;;  %s1019_s15 = smov %s800_s16 }
 0x216   : > { %s1020_s16 = smov %s1022_s20  ;;  %16 = sbr.rel (!%p14_p6) target bundleno = 5 (0x5), region = 75 }
 0x21d   :  { %456 = vsyncpa [#allocation3], 1 }
 0x21e   :  { %458 = vsyncpa [#allocation3 + $0x1], 1 }
 0x21f   :  { %459 = vsyncpa [#allocation4], 1 }
 0x220   :  { %461 = vsyncpa [#allocation4 + $0x1], 1 }

</bundles_post_ra>
